<compile_context>
chip_gen: v6e
topology: v6e:2x2x1
jax: 0.10.0
libtpu: 0.0.40
codegen_flags: <defaults>
</compile_context>

<pallas_src>
import functools

import jax
import jax.numpy as jnp
from jax import lax
from jax.experimental import pallas as pl
from jax.experimental.pallas import tpu as pltpu

TEMPERATURE = 0.1
EPS = 1e-12          # matches torch.nn.functional.normalize default eps
_LANES = 128         # lane-dense output width
_BLOCK_B = 8         # triplets processed per grid step


def _contrastive_loss_kernel(rows_ref, out_ref, *, n_pos):
    # rows_ref: (BB, R, D) with R = 1 + P + N; per triplet, row 0 = query,
    # rows 1..P = positives, rows P+1.. = negatives.
    rows = rows_ref[...].astype(jnp.float32)               # (BB, R, D)
    bb, r, _ = rows.shape
    q = rows[:, 0:1, :]                                    # (BB, 1, D) query rows

    # Two fused lane (XLU) reductions for the whole tile:
    sq = jnp.sum(rows * rows, axis=-1, keepdims=True)      # (BB, R, 1) squared norms
    dots = jnp.sum(rows * q, axis=-1, keepdims=True)       # (BB, R, 1) row . query

    # 1 / max(||x||, eps) == min(rsqrt(||x||^2), 1/eps)  -- rsqrt on the EUP.
    inv_norm = jnp.minimum(lax.rsqrt(sq), jnp.float32(1.0 / EPS))   # (BB, R, 1)
    inv_q = inv_norm[:, 0:1, :]                                     # (BB, 1, 1)

    # Cosine-similarity identity: no per-row normalization of pos/neg needed.
    sims = dots * inv_norm * inv_q * jnp.float32(1.0 / TEMPERATURE)  # (BB, R, 1)

    row_idx = lax.broadcasted_iota(jnp.int32, (bb, r, 1), 1)
    is_body = row_idx >= 1                    # pos + neg rows (exclude query)
    is_pos = is_body & (row_idx <= n_pos)

    # Per-triplet log-sum-exp stabilized denominator over pos+neg rows.
    sims_body = jnp.where(is_body, sims, jnp.float32(-jnp.inf))
    m = jnp.max(sims_body, axis=1, keepdims=True)                    # (BB, 1, 1)
    denom = jnp.sum(jnp.exp(sims_body - m), axis=1, keepdims=True)   # (BB, 1, 1)
    pos_mean = (jnp.sum(jnp.where(is_pos, sims, 0.0), axis=1, keepdims=True)
                * jnp.float32(1.0 / n_pos))                          # (BB, 1, 1)

    # loss = -mean(log(exp(pos_sim) / all_sim)) = log(all_sim) - mean(pos_sim)
    loss = (m + jnp.log(denom)) - pos_mean                           # (BB, 1, 1)

    out_ref[...] = jnp.broadcast_to(loss[:, 0, :], out_ref.shape).astype(
        out_ref.dtype)


def _pallas_loss(rows, n_pos, block_b=_BLOCK_B):
    """rows: (B, 1+P+N, D) -> (B,) float32 losses."""
    b, r, d = rows.shape
    bb = min(block_b, b)
    b_pad = pl.cdiv(b, bb) * bb
    if b_pad != b:
        # Zero-padded triplets produce finite garbage losses that we slice off.
        rows = jnp.pad(rows, ((0, b_pad - b), (0, 0), (0, 0)))

    kernel = functools.partial(_contrastive_loss_kernel, n_pos=n_pos)
    out = pl.pallas_call(
        kernel,
        out_shape=jax.ShapeDtypeStruct((b_pad, _LANES), jnp.float32),
        grid=(b_pad // bb,),
        in_specs=[pl.BlockSpec((bb, r, d), lambda i: (i, 0, 0))],
        out_specs=pl.BlockSpec((bb, _LANES), lambda i: (i, 0)),
        compiler_params=pltpu.CompilerParams(
            dimension_semantics=("parallel",)),
    )(rows)
    return out[:b, 0]


def contrastive_loss_batched(query, pos_emb, neg_emb):
    """query: (B,1,D), pos_emb: (B,P,D), neg_emb: (B,N,D) -> (B,) losses."""
    n_pos = pos_emb.shape[1]
    rows = jnp.concatenate([query, pos_emb, neg_emb], axis=1)   # (B, 1+P+N, D)
    return _pallas_loss(rows, n_pos)


def contrastive_loss(query, pos_emb, neg_emb):
    """Matches the torch module: query (1,D), pos (P,D), neg (N,D) -> scalar."""
    return contrastive_loss_batched(query[None], pos_emb[None], neg_emb[None])[0]


def _reference_loss(query, pos_emb, neg_emb):
    def norm(x):
        return x / jnp.maximum(
            jnp.sqrt(jnp.sum(x * x, axis=-1, keepdims=True)), EPS)
    q = norm(query.astype(jnp.float32))
    p = norm(pos_emb.astype(jnp.float32))
    n = norm(neg_emb.astype(jnp.float32))
    pos_sim = (p @ q.T) / TEMPERATURE
    neg_sim = (n @ q.T) / TEMPERATURE
    all_sim = jnp.sum(jnp.exp(jnp.concatenate([pos_sim, neg_sim], axis=0)))
    return -jnp.mean(jnp.log(jnp.exp(pos_sim) / all_sim))


if __name__ == "__main__":
    key = jax.random.PRNGKey(0)
    k_q, k_p, k_n = jax.random.split(key, 3)

    batch = 4          # triplets per call
    dim = 32           # hidden dim
    n_pos = 8          # positive samples per triplet
    n_neg = 16         # negative samples per triplet

    queries = jax.random.normal(k_q, (batch, 1, dim), dtype=jnp.float32)
    pos_embs = jax.random.normal(k_p, (batch, n_pos, dim), dtype=jnp.float32)
    neg_embs = jax.random.normal(k_n, (batch, n_neg, dim), dtype=jnp.float32)

    # Batched path (one pallas_call, one grid step for this batch).
    losses = contrastive_loss_batched(queries, pos_embs, neg_embs)
    losses = jax.block_until_ready(losses)

    # Single-triplet path matching the torch module signature.
    single = contrastive_loss(queries[0], pos_embs[0], neg_embs[0])
    single = jax.block_until_ready(single)

    ref = jnp.stack([_reference_loss(queries[i], pos_embs[i], neg_embs[i])
                     for i in range(batch)])
    assert jnp.allclose(losses, ref, rtol=1e-4, atol=1e-4), (losses, ref)
    assert jnp.allclose(single, ref[0], rtol=1e-4, atol=1e-4), (single, ref[0])

    print("KERNEL_OK")
</pallas_src>

<mosaic_0001>
module attributes {stable_mosaic.version = 11 : i64} {
  func.func @_contrastive_loss_kernel(%arg0: i32, %arg1: memref<4x25x32xf32, #tpu.memory_space<vmem>>, %arg2: memref<4x128xf32, #tpu.memory_space<vmem>>) attributes {dimension_semantics = [#tpu.dimension_semantics<parallel>], iteration_bounds = array<i64: 1>, scalar_prefetch = 0 : i64, scratch_operands = 0 : i64, tpu.core_type = #tpu.core_type<tc>, window_params = [{transform_indices = @transform_0, window_bounds = array<i64: 4, 25, 32>}, {transform_indices = @transform_1, window_bounds = array<i64: 4, 128>}]} {
    %c0 = arith.constant 0 : index
    %c0_0 = arith.constant 0 : index
    %c0_1 = arith.constant 0 : index
    %0 = vector.load %arg1[%c0, %c0_0, %c0_1] : memref<4x25x32xf32, #tpu.memory_space<vmem>>, vector<4x25x32xf32>
    %1 = vector.extract_strided_slice %0 {offsets = [0, 0, 0], sizes = [4, 1, 32], strides = [1, 1, 1]} : vector<4x25x32xf32> to vector<4x1x32xf32>
    %2 = arith.mulf %0, %0 : vector<4x25x32xf32>
    %cst = arith.constant dense<0.000000e+00> : vector<4x25xf32>
    %3 = vector.multi_reduction <add>, %2, %cst [2] : vector<4x25x32xf32> to vector<4x25xf32>
    %4 = vector.shape_cast %3 : vector<4x25xf32> to vector<4x25x1xf32>
    %5 = vector.broadcast %1 : vector<4x1x32xf32> to vector<4x25x32xf32>
    %6 = arith.mulf %0, %5 : vector<4x25x32xf32>
    %cst_2 = arith.constant dense<0.000000e+00> : vector<4x25xf32>
    %7 = vector.multi_reduction <add>, %6, %cst_2 [2] : vector<4x25x32xf32> to vector<4x25xf32>
    %8 = vector.shape_cast %7 : vector<4x25xf32> to vector<4x25x1xf32>
    %9 = math.rsqrt %4 : vector<4x25x1xf32>
    %cst_3 = arith.constant 9.99999995E+11 : f32
    %10 = vector.broadcast %cst_3 : f32 to vector<4x25x1xf32>
    %11 = arith.minimumf %9, %10 : vector<4x25x1xf32>
    %12 = vector.extract_strided_slice %11 {offsets = [0, 0, 0], sizes = [4, 1, 1], strides = [1, 1, 1]} : vector<4x25x1xf32> to vector<4x1x1xf32>
    %13 = arith.mulf %8, %11 : vector<4x25x1xf32>
    %14 = vector.broadcast %12 : vector<4x1x1xf32> to vector<4x25x1xf32>
    %15 = arith.mulf %13, %14 : vector<4x25x1xf32>
    %cst_4 = arith.constant 1.000000e+01 : f32
    %16 = vector.broadcast %cst_4 : f32 to vector<4x25x1xf32>
    %17 = arith.mulf %15, %16 : vector<4x25x1xf32>
    %18 = tpu.iota {dimensions = array<i32: 1>} : vector<4x25x1xi32>
    %c1_i32 = arith.constant 1 : i32
    %19 = vector.broadcast %c1_i32 : i32 to vector<4x25x1xi32>
    %20 = arith.cmpi sge, %18, %19 : vector<4x25x1xi32>
    %c8_i32 = arith.constant 8 : i32
    %21 = vector.broadcast %c8_i32 : i32 to vector<4x25x1xi32>
    %22 = arith.cmpi sle, %18, %21 : vector<4x25x1xi32>
    %23 = arith.andi %20, %22 : vector<4x25x1xi1>
    %cst_5 = arith.constant 0xFF800000 : f32
    %24 = vector.broadcast %cst_5 : f32 to vector<4x25x1xf32>
    %25 = arith.select %20, %17, %24 : vector<4x25x1xi1>, vector<4x25x1xf32>
    %cst_6 = arith.constant dense<0xFF800000> : vector<4x1xf32>
    %26 = vector.multi_reduction <maximumf>, %25, %cst_6 [1] : vector<4x25x1xf32> to vector<4x1xf32>
    %27 = vector.shape_cast %26 : vector<4x1xf32> to vector<4x1x1xf32>
    %28 = vector.broadcast %27 : vector<4x1x1xf32> to vector<4x25x1xf32>
    %29 = arith.subf %25, %28 : vector<4x25x1xf32>
    %30 = math.exp %29 : vector<4x25x1xf32>
    %cst_7 = arith.constant dense<0.000000e+00> : vector<4x1xf32>
    %31 = vector.multi_reduction <add>, %30, %cst_7 [1] : vector<4x25x1xf32> to vector<4x1xf32>
    %32 = vector.shape_cast %31 : vector<4x1xf32> to vector<4x1x1xf32>
    %cst_8 = arith.constant 0.000000e+00 : f32
    %33 = vector.broadcast %cst_8 : f32 to vector<4x25x1xf32>
    %34 = arith.select %23, %17, %33 : vector<4x25x1xi1>, vector<4x25x1xf32>
    %cst_9 = arith.constant dense<0.000000e+00> : vector<4x1xf32>
    %35 = vector.multi_reduction <add>, %34, %cst_9 [1] : vector<4x25x1xf32> to vector<4x1xf32>
    %36 = vector.shape_cast %35 : vector<4x1xf32> to vector<4x1x1xf32>
    %cst_10 = arith.constant 1.250000e-01 : f32
    %37 = vector.broadcast %cst_10 : f32 to vector<4x1x1xf32>
    %38 = arith.mulf %36, %37 : vector<4x1x1xf32>
    %39 = math.log %32 : vector<4x1x1xf32>
    %40 = arith.addf %27, %39 : vector<4x1x1xf32>
    %41 = arith.subf %40, %38 : vector<4x1x1xf32>
    %42 = vector.shape_cast %41 : vector<4x1x1xf32> to vector<4x1xf32>
    %43 = vector.shape_cast %42 : vector<4x1xf32> to vector<4x1xf32>
    %44 = vector.broadcast %43 : vector<4x1xf32> to vector<4x128xf32>
    %c0_11 = arith.constant 0 : index
    %c0_12 = arith.constant 0 : index
    %45 = vector.load %arg2[%c0_11, %c0_12] : memref<4x128xf32, #tpu.memory_space<vmem>>, vector<4x128xf32>
    tpu.vector_store %arg2[%c0_11, %c0_12], %44 {strides = array<i32>} : memref<4x128xf32, #tpu.memory_space<vmem>>, vector<4x128xf32>,
    return
  }
  func.func @transform_0(%arg0: i32) -> (i32, i32, i32) {
    %c0_i32 = arith.constant 0 : i32
    %c0_i32_0 = arith.constant 0 : i32
    %c0_i32_1 = arith.constant 0 : i32
    return %arg0, %c0_i32, %c0_i32_0 : i32, i32, i32
  }
  func.func @transform_1(%arg0: i32) -> (i32, i32) {
    %c0_i32 = arith.constant 0 : i32
    %c0_i32_0 = arith.constant 0 : i32
    return %arg0, %c0_i32 : i32, i32
  }
}

</mosaic_0001>

<bundles_post_ra>
// kernel: tpu_custom_call.1
= control target key start
LH: loop header
LB: loop body
LE: loop exit
PB: predicated region body
PF: predicated region fallthrough
CT: control target
= control target key end

     0   :  { %vm41_vm0 = vcmask 261120   ;;  %s947_s0 = inlined_call_operand.vmem [shape: f32[4,25,32], index: 0, kind: input, shape index: {}]   ;;  %s948_s1 = inlined_call_operand.hbm [shape: f32[4,128], index: 1, kind: output, shape index: {}]  }
   0x1   :  { %v640_v0 = vld [vmem:[%s947_s0 + $0x8] sm:$0xff]  ;;  %v645_v1 = vld [vmem:[%s947_s0] sm:$0xff]  ;;  %v686_v16 = vld [vmem:[%s947_s0 + $0x10] sm:$0xff] }
   0x2   :  { %v650_v2 = vld [vmem:[%s947_s0 + $0x28] sm:$0xff]  ;;  %v26_v3 = vmul.f32 %v640_v0, %v640_v0  ;;  %v25_v4 = vmul.f32 %v645_v1, %v645_v1  ;;  %v661_v6 = vld [vmem:[%s947_s0 + $0x20] sm:$0xff] }
   0x3   :  { %v30_v5 = vmul.f32 %v650_v2, %v650_v2  ;;  %v29_v7 = vmul.f32 %v661_v6, %v661_v6  ;;  %v668_v8 = vld [vmem:[%s947_s0 + $0x48] sm:$0xff]  ;;  %v673_v9 = vld [vmem:[%s947_s0 + $0x40] sm:$0xff] }
   0x4   :  { %v45_v10 = vsel %vm41_vm0, %v26_v3, 0.0  ;;  %v42_v11 = vsel %vm41_vm0, %v25_v4, 0.0  ;;  %v34_v14 = vmul.f32 %v668_v8, %v668_v8  ;;  %v33_v15 = vmul.f32 %v673_v9, %v673_v9  ;;  %v691_v17 = vld [vmem:[%s947_s0 + $0x60] sm:$0xff] }
   0x5   :  { %46 = vadd.xlane.f32.xlu1 %v45_v10  ;;  %43 = vadd.xlane.f32.xlu0 %v42_v11  ;;  %v58_v12 = vsel %vm41_vm0, %v30_v5, 0.0  ;;  %v55_v13 = vsel %vm41_vm0, %v29_v7, 0.0 }
   0x6   :  { %6 = vsyncpa [#allocation3], 0  ;;  %v70_v18 = vsel %vm41_vm0, %v34_v14, 0.0  ;;  %v67_v19 = vsel %vm41_vm0, %v33_v15, 0.0  ;;  %v27_v20 = vmul.f32 %v686_v16, %v686_v16  ;;  %v37_v21 = vmul.f32 %v691_v17, %v691_v17  ;;  %v702_v22 = vld [vmem:[%s947_s0 + $0x68] sm:$0xff]  ;;  %v707_v23 = vld [vmem:[%s947_s0 + $0x30] sm:$0xff] }
   0x7   :  { %v91_v24 = vlaneseq  ;;  %v38_v27 = vmul.f32 %v702_v22, %v702_v22  ;;  %v31_v28 = vmul.f32 %v707_v23, %v707_v23  ;;  %v718_v29 = vld [vmem:[%s947_s0 + $0x38] sm:$0x1]  ;;  %vm51_vm1 = vcmask 253952   ;;  %v19_v37 = vld [vmem:[%s947_s0 + $0x50] sm:$0xff] }
   0x8   :  { %v48_v25 = vsel %vm41_vm0, %v27_v20, 0.0  ;;  %v79_v26 = vsel %vm41_vm0, %v37_v21, 0.0  ;;  %v723_v30 = vld [vmem:[%s947_s0 + $0x18] sm:$0x1]  ;;  %v32_v34 = vmul.f32 %v718_v29, %v718_v29  ;;  %v35_v42 = vmul.f32 %v19_v37, %v19_v37  ;;  %v23_v44 = vld [vmem:[%s947_s0 + $0x70] sm:$0xff] }
   0x9   :  { %59 = vadd.xlane.f32.xlu1 %v58_v12  ;;  %56 = vadd.xlane.f32.xlu0 %v55_v13  ;;  %v725_v31 = vshrl.u32 %v91_v24, 7  ;;  %v82_v32 = vsel %vm41_vm0, %v38_v27, 0.0  ;;  %v61_v33 = vsel %vm41_vm0, %v31_v28, 0.0  ;;  %v28_v35 = vmul.f32 %v723_v30, %v723_v30  ;;  %v20_v36 = vld [vmem:[%s947_s0 + $0x58] sm:$0x1] }
   0xa   :  { %v64_v39 = vsel %vm51_vm1, %v32_v34, 0.0  ;;  %v36_v41 = vmul.f32 %v20_v36, %v20_v36  ;;  %v24_v43 = vld [vmem:[%s947_s0 + $0x78] sm:$0x1]  ;;  %v73_v48 = vsel %vm41_vm0, %v35_v42, 0.0  ;;  %v39_v50 = vmul.f32 %v23_v44, %v23_v44  ;;  %s626_s0 = smov [#allocation2]  }
   0xb   :  { %v740_v38 = vsub.s32 0, %v725_v31  ;;  %v52_v40 = vsel %vm51_vm1, %v28_v35, 0.0  ;;  %v40_v49 = vmul.f32 %v24_v43, %v24_v43  ;;  %vm272_vm2 = vcmp.ge.s32.totalorder %v725_v31, 1  ;;  %s523_s9 = sshll.u32 %s626_s0, 4  ;;  %s524_s9 = int_to_ptr.vmem [resolvable:$true] %s523_s9 }
   0xc   :  { %v76_v47 = vsel %vm51_vm1, %v36_v41, 0.0  ;;  %v85_v52 = vsel %vm41_vm0, %v39_v50, 0.0  ;;  %vm302_vm3 = vcmask 1040384   ;;  %vm509_vm5 = vcmask 1041409   ;;  %s604_s10 = scalar_lea.vmem %s524_s9, 64  ;;  %p609_p1 = scmp.lt.s32.totalorder %s524_s9, %s524_s9 }
   0xd   :  { %71 = vadd.xlane.f32.xlu1 %v70_v18  ;;  %68 = vadd.xlane.f32.xlu0 %v67_v19  ;;  %v94_v45 = vrot.slane %v645_v1, %v740_v38  ;;  %v98_v46 = vrot.slane %v661_v6, %v740_v38  ;;  %v88_v51 = vsel %vm51_vm1, %v40_v49, 0.0  ;;  %v102_v55 = vrot.slane %v673_v9, %v740_v38  ;;  %p605_p0 = scmp.ne.s32.totalorder %s524_s9, %s604_s10  ;;  %p610_p2 = scmp.lt.s32.totalorder %s604_s10, %s604_s10 }
   0xe   :  { %v106_v60 = vrot.slane %v691_v17, %v740_v38  ;;  %vm511_vm6 = vcmask 1042434   ;;  %vm513_vm7 = vcmask 1043459  }
   0xf   :  { %v111_v53 = vmul.f32 %v98_v46, %v661_v6  ;;  %v107_v54 = vmul.f32 %v94_v45, %v645_v1  ;;  %v112_v58 = vmul.f32 %v98_v46, %v650_v2  ;;  %v108_v59 = vmul.f32 %v94_v45, %v640_v0  ;;  %p611_p3 = por %p610_p2, %p609_p1 }
  0x10   :  { %v116_v63 = vmul.f32 %v102_v55, %v668_v8  ;;  %v115_v1 = vmul.f32 %v102_v55, %v673_v9  ;;  %v109_v0 = vmul.f32 %v94_v45, %v686_v16  ;;  %v119_v4 = vmul.f32 %v106_v60, %v691_v17 }
  0x11   :  { %49 = vadd.xlane.f32.xlu1 %v48_v25  ;;  %80 = vadd.xlane.f32.xlu0 %v79_v26  ;;  %v135_v56 = vsel %vm41_vm0, %v111_v53, 0.0  ;;  %v123_v57 = vsel %vm41_vm0, %v107_v54, 0.0  ;;  %v138_v61 = vsel %vm41_vm0, %v112_v58, 0.0  ;;  %v126_v62 = vsel %vm41_vm0, %v108_v59, 0.0  ;;  %p612_p4 = pnand %p611_p3, %p605_p0 }
  0x12   :  { %v150_v3 = vsel %vm41_vm0, %v116_v63, 0.0  ;;  %v147_v2 = vsel %vm41_vm0, %v115_v1, 0.0  ;;  %v129_v5 = vsel %vm41_vm0, %v109_v0, 0.0  ;;  %v159_v6 = vsel %vm41_vm0, %v119_v4, 0.0 }
  0x13   :  { %v120_v7 = vmul.f32 %v106_v60, %v702_v22  ;;  %v113_v8 = vmul.f32 %v98_v46, %v707_v23  ;;  %v114_v11 = vmul.f32 %v98_v46, %v718_v29  ;;  %v110_v12 = vmul.f32 %v94_v45, %v723_v30 }
  0x14   :  { %v118_v15 = vmul.f32 %v102_v55, %v20_v36  ;;  %v117_v16 = vmul.f32 %v102_v55, %v19_v37  ;;  %v122_v19 = vmul.f32 %v106_v60, %v24_v43  ;;  %v121_v20 = vmul.f32 %v106_v60, %v23_v44 }
  0x15   :  { %83 = vadd.xlane.f32.xlu1 %v82_v32  ;;  %62 = vadd.xlane.f32.xlu0 %v61_v33  ;;  %v162_v9 = vsel %vm41_vm0, %v120_v7, 0.0  ;;  %v141_v10 = vsel %vm41_vm0, %v113_v8, 0.0  ;;  %v144_v13 = vsel %vm51_vm1, %v114_v11, 0.0  ;;  %v132_v14 = vsel %vm51_vm1, %v110_v12, 0.0 }
  0x16   :  { %v156_v17 = vsel %vm51_vm1, %v118_v15, 0.0  ;;  %v153_v18 = vsel %vm41_vm0, %v117_v16, 0.0  ;;  %v168_v21 = vsel %vm51_vm1, %v122_v19, 0.0  ;;  %v165_v22 = vsel %vm41_vm0, %v121_v20, 0.0 }
  0x19   :  { %65 = vadd.xlane.f32.xlu1 %v64_v39  ;;  %53 = vadd.xlane.f32.xlu0 %v52_v40 }
  0x1d   :  { %77 = vadd.xlane.f32.xlu1 %v76_v47  ;;  %74 = vadd.xlane.f32.xlu0 %v73_v48 }
  0x21   :  { %89 = vadd.xlane.f32.xlu1 %v88_v51  ;;  %86 = vadd.xlane.f32.xlu0 %v85_v52 }
  0x25   :  { %136 = vadd.xlane.f32.xlu1 %v135_v56  ;;  %124 = vadd.xlane.f32.xlu0 %v123_v57 }
  0x29   :  { %139 = vadd.xlane.f32.xlu1 %v138_v61  ;;  %127 = vadd.xlane.f32.xlu0 %v126_v62 }
  0x2d   :  { %151 = vadd.xlane.f32.xlu1 %v150_v3  ;;  %148 = vadd.xlane.f32.xlu0 %v147_v2 }
  0x31   :  { %130 = vadd.xlane.f32.xlu1 %v129_v5  ;;  %160 = vadd.xlane.f32.xlu0 %v159_v6 }
  0x35   :  { %163 = vadd.xlane.f32.xlu1 %v162_v9  ;;  %142 = vadd.xlane.f32.xlu0 %v141_v10 }
  0x39   :  { %145 = vadd.xlane.f32.xlu1 %v144_v13  ;;  %133 = vadd.xlane.f32.xlu0 %v132_v14 }
  0x3d   :  { %157 = vadd.xlane.f32.xlu1 %v156_v17  ;;  %154 = vadd.xlane.f32.xlu0 %v153_v18 }
  0x41   :  { %169 = vadd.xlane.f32.xlu1 %v168_v21  ;;  %166 = vadd.xlane.f32.xlu0 %v165_v22 }
  0x8e   :  { %v47_v23 = vpop.xlane.xlu1 %46  ;;  %v44_v24 = vpop.xlane.xlu0 %43 }
  0x92   :  { %v60_v25 = vpop.xlane.xlu1 %59  ;;  %v57_v26 = vpop.xlane.xlu0 %56 }
  0x93   :  { %532 = vrsqrt.f32 %v57_v26 }
  0x94   :  { %534 = vrsqrt.f32 %v44_v24 }
  0x95   :  { %536 = vrsqrt.f32 %v47_v23 }
  0x96   :  { %v72_v27 = vpop.xlane.xlu1 %71  ;;  %v69_v28 = vpop.xlane.xlu0 %68  ;;  %538 = vrsqrt.f32 %v60_v25 }
  0x97   :  { %540 = vrsqrt.f32 %v69_v28 }
  0x98   :  { %542 = vrsqrt.f32 %v72_v27 }
  0x9a   :  { %v50_v29 = vpop.xlane.xlu1 %49  ;;  %v81_v30 = vpop.xlane.xlu0 %80 }
  0x9b   :  { %544 = vrsqrt.f32 %v50_v29 }
  0x9c   :  { %546 = vrsqrt.f32 %v81_v30 }
  0x9e   :  { %v84_v32 = vpop.xlane.xlu1 %83  ;;  %v63_v33 = vpop.xlane.xlu0 %62 }
  0x9f   :  { %548 = vrsqrt.f32 %v63_v33 }
  0xa0   :  { %550 = vrsqrt.f32 %v84_v32  ;;  %v533_v43 = vpop.eup %532 }
  0xa1   :  { %v535_v44 = vpop.eup %534  ;;  %v191_v48 = vmin.f32 %v533_v43, 1e+12 }
  0xa2   :  { %v66_v34 = vpop.xlane.xlu1 %65  ;;  %v54_v35 = vpop.xlane.xlu0 %53  ;;  %v187_v50 = vmin.f32 %v535_v44, 1e+12 }
  0xa3   :  { %552 = vrsqrt.f32 %v66_v34  ;;  %v537_v47 = vpop.eup %536  ;;  %v791_v59 = vrot.slane %v191_v48, %v740_v38 }
  0xa4   :  { %554 = vrsqrt.f32 %v54_v35  ;;  %v539_v49 = vpop.eup %538  ;;  %v188_v57 = vmin.f32 %v537_v47, 1e+12  ;;  %v222_v62 = vrot.slane %v187_v50, %v740_v38 }
  0xa5   :  { %v541_v51 = vpop.eup %540  ;;  %v192_v63 = vmin.f32 %v539_v49, 1e+12 }
  0xa6   :  { %v78_v36 = vpop.xlane.xlu1 %77  ;;  %v75_v37 = vpop.xlane.xlu0 %74  ;;  %v195_v61 = vmin.f32 %v541_v51, 1e+12 }
  0xa7   :  { %556 = vrsqrt.f32 %v78_v36  ;;  %v543_v55 = vpop.eup %542 }
  0xa8   :  { %558 = vrsqrt.f32 %v75_v37  ;;  %v545_v58 = vpop.eup %544  ;;  %v196_v10 = vmin.f32 %v543_v55, 1e+12  ;;  %v230_v13 = vrot.slane %v195_v61, %v740_v38 }
  0xa9   :  { %v547_v60 = vpop.eup %546  ;;  %v189_v8 = vmin.f32 %v545_v58, 1e+12 }
  0xaa   :  { %v90_v39 = vpop.xlane.xlu1 %89  ;;  %v87_v40 = vpop.xlane.xlu0 %86  ;;  %v199_v11 = vmin.f32 %v547_v60, 1e+12 }
  0xab   :  { %560 = vrsqrt.f32 %v90_v39 }
  0xac   :  { %562 = vrsqrt.f32 %v87_v40  ;;  %v549_v4 = vpop.eup %548  ;;  %v803_v26 = vrot.slane %v199_v11, %v740_v38 }
  0xad   :  { %v551_v9 = vpop.eup %550  ;;  %v193_v20 = vmin.f32 %v549_v4, 1e+12 }
  0xae   :  { %v137_v41 = vpop.xlane.xlu1 %136  ;;  %v125_v42 = vpop.xlane.xlu0 %124  ;;  %v200_v27 = vmin.f32 %v551_v9, 1e+12 }
  0xaf   :  { %v207_v52 = vmul.f32 %v191_v48, %v137_v41  ;;  %v203_v56 = vmul.f32 %v187_v50, %v125_v42 }
  0xb0   :  { %v553_v12 = vpop.eup %552 }
  0xb1   :  { %v239_v3 = vmul.f32 %v791_v59, %v207_v52  ;;  %v235_v5 = vmul.f32 %v222_v62, %v203_v56  ;;  %v555_v16 = vpop.eup %554  ;;  %v194_v33 = vmin.f32 %v553_v12, 1e+12 }
  0xb2   :  { %v140_v45 = vpop.xlane.xlu1 %139  ;;  %v128_v46 = vpop.xlane.xlu0 %127  ;;  %v190_v34 = vmin.f32 %v555_v16, 1e+12 }
  0xb3   :  { %v204_v1 = vmul.f32 %v188_v57, %v128_v46  ;;  %v208_v6 = vmul.f32 %v192_v63, %v140_v45  ;;  %v796_v17 = vmul.f32 10.0, %v239_v3  ;;  %v799_v22 = vmul.f32 10.0, %v235_v5 }
  0xb4   :  { %v557_v25 = vpop.eup %556 }
  0xb5   :  { %v236_v14 = vmul.f32 %v222_v62, %v204_v1  ;;  %v240_v23 = vmul.f32 %v791_v59, %v208_v6  ;;  %v559_v29 = vpop.eup %558  ;;  %v810_v36 = vsel %vm272_vm2, %v796_v17, -inf  ;;  %v816_v42 = vsel %vm272_vm2, %v799_v22, -inf }
  0xb6   :  { %v152_v53 = vpop.xlane.xlu1 %151  ;;  %v149_v54 = vpop.xlane.xlu0 %148  ;;  %v198_v45 = vmin.f32 %v557_v25, 1e+12  ;;  %v197_v49 = vmin.f32 %v559_v29, 1e+12 }
  0xb7   :  { %v211_v7 = vmul.f32 %v195_v61, %v149_v54  ;;  %v212_v18 = vmul.f32 %v196_v10, %v152_v53  ;;  %v805_v30 = vmul.f32 10.0, %v236_v14  ;;  %v818_v43 = vmul.f32 10.0, %v240_v23 }
  0xb8   :  { %v561_v35 = vpop.eup %560 }
  0xb9   :  { %v243_v24 = vmul.f32 %v230_v13, %v211_v7  ;;  %v244_v37 = vmul.f32 %v230_v13, %v212_v18  ;;  %v563_v50 = vpop.eup %562  ;;  %v300_v52 = vmax.f32 %v816_v42, %v805_v30  ;;  %v202_v54 = vmin.f32 %v561_v35, 1e+12 }
  0xba   :  { %v131_v2 = vpop.xlane.xlu1 %130  ;;  %v161_v0 = vpop.xlane.xlu0 %160  ;;  %v311_v1 = vmax.f32 %v810_v36, %v818_v43  ;;  %v201_v6 = vmin.f32 %v563_v50, 1e+12 }
  0xbb   :  { %v205_v15 = vmul.f32 %v189_v8, %v131_v2  ;;  %v215_v39 = vmul.f32 %v199_v11, %v161_v0  ;;  %v820_v44 = vmul.f32 10.0, %v243_v24  ;;  %v828_v55 = vmul.f32 10.0, %v244_v37 }
  0xbd   :  { %v237_v32 = vmul.f32 %v222_v62, %v205_v15  ;;  %v247_v56 = vmul.f32 %v803_v26, %v215_v39  ;;  %v835_v63 = vsel %vm272_vm2, %v820_v44, -inf }
  0xbe   :  { %v164_v19 = vpop.xlane.xlu1 %163  ;;  %v143_v21 = vpop.xlane.xlu0 %142  ;;  %v321_v9 = vmax.f32 %v835_v63, %v828_v55 }
  0xbf   :  { %v209_v28 = vmul.f32 %v193_v20, %v143_v21  ;;  %v216_v46 = vmul.f32 %v200_v27, %v164_v19  ;;  %v822_v51 = vmul.f32 10.0, %v237_v32  ;;  %v846_v10 = vmul.f32 10.0, %v247_v56 }
  0xc1   :  { %v241_v38 = vmul.f32 %v791_v59, %v209_v28  ;;  %v248_v0 = vmul.f32 %v803_v26, %v216_v46 }
  0xc2   :  { %v146_v40 = vpop.xlane.xlu1 %145  ;;  %v134_v41 = vpop.xlane.xlu0 %133 }
  0xc3   :  { %v210_v47 = vmul.f32 %v194_v33, %v146_v40  ;;  %v206_v48 = vmul.f32 %v190_v34, %v134_v41  ;;  %v826_v53 = vmul.f32 10.0, %v241_v38  ;;  %v855_v21 = vmul.f32 10.0, %v248_v0 }
  0xc4   :  { %v865_v33 = vsel %vm272_vm2, %v846_v10, -inf }
  0xc5   :  { %v242_v57 = vmul.f32 %v791_v59, %v210_v47  ;;  %v238_v58 = vmul.f32 %v222_v62, %v206_v48  ;;  %v301_v59 = vmax.f32 %v300_v52, %v822_v51  ;;  %v312_v62 = vmax.f32 %v311_v1, %v826_v53 }
  0xc6   :  { %v158_v60 = vpop.xlane.xlu1 %157  ;;  %v155_v61 = vpop.xlane.xlu0 %154  ;;  %v331_v38 = vmax.f32 %v865_v33, %v855_v21 }
  0xc7   :  { %v214_v3 = vmul.f32 %v198_v45, %v158_v60  ;;  %v213_v2 = vmul.f32 %v197_v49, %v155_v61  ;;  %v258_v4 = vmul.f32 10.0, %v242_v57  ;;  %v840_v5 = vmul.f32 10.0, %v238_v58 }
  0xc9   :  { %v246_v7 = vmul.f32 %v230_v13, %v214_v3  ;;  %v245_v8 = vmul.f32 %v230_v13, %v213_v2  ;;  %v313_v11 = vsel %vm302_vm3, %v258_v4, -inf  ;;  %v303_v12 = vsel %vm302_vm3, %v840_v5, -inf }
  0xca   :  { %v170_v14 = vpop.xlane.xlu1 %169  ;;  %v167_v15 = vpop.xlane.xlu0 %166  ;;  %v314_v16 = vmax.f32 %v312_v62, %v313_v11  ;;  %v304_v18 = vmax.f32 %v301_v59, %v303_v12 }
  0xcb   :  { %v851_v19 = vmul.f32 10.0, %v246_v7  ;;  %v853_v20 = vmul.f32 10.0, %v245_v8  ;;  %v218_v13 = vmul.f32 %v202_v54, %v170_v14  ;;  %v217_v23 = vmul.f32 %v201_v6, %v167_v15 }
  0xcc   :  { %v315_v24 = vrot.slane %v314_v16, 4  ;;  %v305_v25 = vrot.slane %v304_v18, 4 }
  0xcd   :  { %v323_v27 = vsel %vm302_vm3, %v851_v19, -inf  ;;  %v322_v28 = vmax.f32 %v321_v9, %v853_v20  ;;  %v250_v29 = vmul.f32 %v803_v26, %v218_v13  ;;  %v249_v32 = vmul.f32 %v803_v26, %v217_v23 }
  0xce   :  { %v316_v34 = vmax.f32 %v314_v16, %v315_v24  ;;  %v306_v35 = vmax.f32 %v304_v18, %v305_v25 }
  0xcf   :  { %v324_v37 = vmax.f32 %v322_v28, %v323_v27  ;;  %v867_v39 = vmul.f32 10.0, %v250_v29  ;;  %v871_v40 = vmul.f32 10.0, %v249_v32 }
  0xd0   :  { %v317_v41 = vrot.slane %v316_v34, 2  ;;  %v307_v45 = vrot.slane %v306_v35, 2 }
  0xd1   :  { %v325_v46 = vrot.slane %v324_v37, 4  ;;  %v333_v26 = vsel %vm302_vm3, %v867_v39, -inf  ;;  %v332_v47 = vmax.f32 %v331_v38, %v871_v40 }
  0xd2   :  { %v318_v48 = vmax.f32 %v316_v34, %v317_v41  ;;  %v308_v49 = vmax.f32 %v306_v35, %v307_v45 }
  0xd3   :  { %v326_v50 = vmax.f32 %v324_v37, %v325_v46  ;;  %v334_v52 = vmax.f32 %v332_v47, %v333_v26 }
  0xd4   :  { %v319_v54 = vrot.slane %v318_v48, 1  ;;  %v309_v56 = vrot.slane %v308_v49, 1 }
  0xd5   :  { %v327_v57 = vrot.slane %v326_v50, 2  ;;  %v335_v58 = vrot.slane %v334_v52, 4 }
  0xd6   :  { %v876_v60 = vmax.f32 %v318_v48, %v319_v54  ;;  %v878_v61 = vmax.f32 %v308_v49, %v309_v56  ;;  %v269_v56 = vadd.s32 8, %v725_v31 }
  0xd7   :  { %v328_v1 = vmax.f32 %v326_v50, %v327_v57  ;;  %v336_v7 = vmax.f32 %v334_v52, %v335_v58 }
  0xd8   :  { %v345_v3 = vsub.f32 %v810_v36, %v876_v60  ;;  %v346_v2 = vsub.f32 %v818_v43, %v876_v60  ;;  %v347_v0 = vsub.f32 %v826_v53, %v876_v60  ;;  %v348_v6 = vsub.f32 %v258_v4, %v876_v60 }
  0xd9   :  { %v341_v59 = vsub.f32 %v816_v42, %v878_v61  ;;  %v342_v62 = vsub.f32 %v805_v30, %v878_v61  ;;  %v343_v36 = vsub.f32 %v822_v51, %v878_v61  ;;  %v344_v14 = vsub.f32 %v840_v5, %v878_v61 }
  0xda   :  { %v365_v8 = vmul.f32 1.442695, %v345_v3  ;;  %v367_v9 = vmul.f32 1.442695, %v346_v2  ;;  %v369_v11 = vmul.f32 1.442695, %v347_v0 }
  0xdb   :  { %v371_v12 = vmul.f32 1.442695, %v348_v6  ;;  %v357_v53 = vmul.f32 1.442695, %v341_v59  ;;  %v329_v4 = vrot.slane %v328_v1, 1  ;;  %v337_v42 = vrot.slane %v336_v7, 2 }
  0xdc   :  { %564 = vpow2.f32 %v365_v8  ;;  %v359_v15 = vmul.f32 1.442695, %v342_v62  ;;  %v361_v16 = vmul.f32 1.442695, %v343_v36  ;;  %v363_v13 = vmul.f32 1.442695, %v344_v14 }
  0xdd   :  { %566 = vpow2.f32 %v367_v9  ;;  %v895_v18 = vmax.f32 %v328_v1, %v329_v4  ;;  %v338_v23 = vmax.f32 %v336_v7, %v337_v42  ;;  %vm277_vm4 = vcmp.le.s32.totalorder %v269_v56, 8 }
  0xde   :  { %568 = vpow2.f32 %v369_v11  ;;  %v434_v4 = vsel %vm277_vm4, %v818_v43, 0.0  ;;  %v438_v42 = vsel %vm277_vm4, %v828_v55, 0.0  ;;  %v433_v43 = vsel %vm272_vm2, %v796_v17, 0.0 }
  0xdf   :  { %570 = vpow2.f32 %v371_v12  ;;  %v349_v51 = vsub.f32 %v835_v63, %v895_v18  ;;  %v350_v5 = vsub.f32 %v828_v55, %v895_v18  ;;  %v351_v24 = vsub.f32 %v853_v20, %v895_v18 }
  0xe0   :  { %572 = vpow2.f32 %v357_v53  ;;  %v352_v25 = vsub.f32 %v851_v19, %v895_v18  ;;  %v339_v27 = vrot.slane %v338_v23, 1  ;;  %v429_v55 = vsel %vm272_vm2, %v799_v22, 0.0 }
  0xe1   :  { %574 = vpow2.f32 %v359_v15  ;;  %v373_v28 = vmul.f32 1.442695, %v349_v51  ;;  %v375_v29 = vmul.f32 1.442695, %v350_v5  ;;  %v377_v32 = vmul.f32 1.442695, %v351_v24 }
  0xe2   :  { %576 = vpow2.f32 %v361_v16  ;;  %v379_v34 = vmul.f32 1.442695, %v352_v25  ;;  %v905_v35 = vmax.f32 %v338_v23, %v339_v27  ;;  %v430_v15 = vsel %vm277_vm4, %v805_v30, 0.0 }
  0xe3   :  { %578 = vpow2.f32 %v363_v13  ;;  %v437_v23 = vsel %vm272_vm2, %v820_v44, 0.0  ;;  %v441_v22 = vsel %vm272_vm2, %v846_v10, 0.0 }
  0xe4   :  { %580 = vpow2.f32 %v373_v28  ;;  %v353_v63 = vsub.f32 %v865_v33, %v905_v35  ;;  %v354_v20 = vsub.f32 %v855_v21, %v905_v35  ;;  %v355_v19 = vsub.f32 %v871_v40, %v905_v35 }
  0xe5   :  { %582 = vpow2.f32 %v375_v29  ;;  %v356_v37 = vsub.f32 %v867_v39, %v905_v35  ;;  %v465_v44 = vadd.f32 %v438_v42, %v437_v23 }
  0xe6   :  { %584 = vpow2.f32 %v377_v32  ;;  %v381_v38 = vmul.f32 1.442695, %v353_v63  ;;  %v383_v41 = vmul.f32 1.442695, %v354_v20  ;;  %v385_v45 = vmul.f32 1.442695, %v355_v19 }
  0xe7   :  { %586 = vpow2.f32 %v379_v34  ;;  %v387_v46 = vmul.f32 1.442695, %v356_v37  ;;  %v455_v34 = vadd.f32 %v434_v4, %v433_v43  ;;  %v445_v63 = vadd.f32 %v430_v15, %v429_v55 }
  0xe8   :  { %588 = vpow2.f32 %v381_v38  ;;  %v442_v19 = vsel %vm277_vm4, %v855_v21, 0.0 }
  0xe9   :  { %v565_v26 = vpop.eup %564  ;;  %590 = vpow2.f32 %v383_v41 }
  0xea   :  { %v567_v47 = vpop.eup %566  ;;  %592 = vpow2.f32 %v385_v45 }
  0xeb   :  { %v569_v33 = vpop.eup %568  ;;  %v399_v48 = vadd.f32 %v567_v47, %v565_v26  ;;  %594 = vpow2.f32 %v387_v46  ;;  %v459_v47 = vrot.slane %v455_v34, 4 }
  0xec   :  { %v571_v49 = vpop.eup %570 }
  0xed   :  { %v573_v50 = vpop.eup %572  ;;  %v400_v40 = vadd.f32 %v569_v33, %v399_v48  ;;  %v401_v54 = vsel %vm302_vm3, %v571_v49, 0.0  ;;  %v449_v33 = vrot.slane %v445_v63, 4  ;;  %v475_v48 = vadd.f32 %v442_v19, %v441_v22 }
  0xee   :  { %v575_v52 = vpop.eup %574 }
  0xef   :  { %v577_v39 = vpop.eup %576  ;;  %v402_v57 = vadd.f32 %v401_v54, %v400_v40  ;;  %v389_v58 = vadd.f32 %v575_v52, %v573_v50  ;;  %v469_v50 = vrot.slane %v465_v44, 4  ;;  %v450_v56 = vadd.f32 %v449_v33, %v445_v63 }
  0xf0   :  { %v579_v1 = vpop.eup %578 }
  0xf1   :  { %v581_v3 = vpop.eup %580  ;;  %v403_v2 = vrot.slane %v402_v57, 4  ;;  %v390_v0 = vadd.f32 %v577_v39, %v389_v58  ;;  %v391_v59 = vsel %vm302_vm3, %v579_v1, 0.0  ;;  %v460_v39 = vadd.f32 %v459_v47, %v455_v34 }
  0xf2   :  { %v583_v6 = vpop.eup %582  ;;  %v470_v1 = vadd.f32 %v469_v50, %v465_v44 }
  0xf3   :  { %v585_v62 = vpop.eup %584  ;;  %v392_v7 = vadd.f32 %v391_v59, %v390_v0  ;;  %v409_v8 = vadd.f32 %v583_v6, %v581_v3  ;;  %v404_v9 = vadd.f32 %v403_v2, %v402_v57  ;;  %v479_v57 = vrot.slane %v475_v48, 4 }
  0xf4   :  { %v587_v11 = vpop.eup %586  ;;  %v461_v3 = vrot.slane %v460_v39, 2  ;;  %v451_v2 = vrot.slane %v450_v56, 2  ;;  %v471_v59 = vrot.slane %v470_v1, 2 }
  0xf5   :  { %v393_v36 = vrot.slane %v392_v7, 4  ;;  %v410_v12 = vadd.f32 %v585_v62, %v409_v8  ;;  %v405_v14 = vrot.slane %v404_v9, 2  ;;  %v589_v53 = vpop.eup %588  ;;  %v411_v16 = vsel %vm302_vm3, %v587_v11, 0.0 }
  0xf6   :  { %v591_v13 = vpop.eup %590  ;;  %v480_v0 = vadd.f32 %v479_v57, %v475_v48  ;;  %v452_v8 = vadd.f32 %v451_v2, %v450_v56  ;;  %v472_v11 = vadd.f32 %v471_v59, %v470_v1 }
  0xf7   :  { %v412_v51 = vadd.f32 %v411_v16, %v410_v12  ;;  %v394_v5 = vadd.f32 %v393_v36, %v392_v7  ;;  %v406_v24 = vadd.f32 %v405_v14, %v404_v9  ;;  %v593_v25 = vpop.eup %592  ;;  %v419_v27 = vadd.f32 %v591_v13, %v589_v53 }
  0xf8   :  { %v595_v30 = vpop.eup %594  ;;  %v462_v7 = vadd.f32 %v461_v3, %v460_v39  ;;  %v481_v9 = vrot.slane %v480_v0, 2  ;;  %v453_v53 = vrot.slane %v452_v8, 1  ;;  %v473_v15 = vrot.slane %v472_v11, 1 }
  0xf9   :  { %v395_v28 = vrot.slane %v394_v5, 2  ;;  %v407_v29 = vrot.slane %v406_v24, 1  ;;  %v413_v32 = vrot.slane %v412_v51, 4  ;;  %v420_v20 = vadd.f32 %v593_v25, %v419_v27 }
  0xfa   :  { %v421_v17 = vsel %vm302_vm3, %v595_v30, 0.0  ;;  %v463_v14 = vrot.slane %v462_v7, 1  ;;  %v482_v4 = vadd.f32 %v481_v9, %v480_v0  ;;  %v454_v23 = vadd.f32 %v453_v53, %v452_v8 }
  0xfb   :  { %v396_v37 = vadd.f32 %v395_v28, %v394_v5  ;;  %v414_v38 = vadd.f32 %v413_v32, %v412_v51  ;;  %v408_v41 = vadd.f32 %v407_v29, %v406_v24  ;;  %v422_v45 = vadd.f32 %v421_v17, %v420_v20 }
  0xfc   :  { %v464_v51 = vadd.f32 %v463_v14, %v462_v7  ;;  %v483_v5 = vrot.slane %v482_v4, 1  ;;  %v474_v24 = vadd.f32 %v473_v15, %v472_v11  ;;  %v485_v28 = vmul.f32 0.125, %v454_v23 }
  0xfd   :  { %v397_v46 = vrot.slane %v396_v37, 1  ;;  %v415_v26 = vrot.slane %v414_v38, 2  ;;  %v423_v49 = vrot.slane %v422_v45, 4  ;;  %596 = vlog2.f32 %v408_v41 }
  0xfe   :  { %v484_v55 = vadd.f32 %v483_v5, %v482_v4  ;;  %v486_v29 = vmul.f32 0.125, %v464_v51  ;;  %v487_v34 = vmul.f32 0.125, %v474_v24 }
  0xff   :  { %v398_v40 = vadd.f32 %v397_v46, %v396_v37  ;;  %v416_v52 = vadd.f32 %v415_v26, %v414_v38  ;;  %v424_v21 = vadd.f32 %v423_v49, %v422_v45 }
 0x100   :  { %v488_v37 = vmul.f32 0.125, %v484_v55 }
 0x101   :  { %v417_v54 = vrot.slane %v416_v52, 1  ;;  %598 = vlog2.f32 %v398_v40  ;;  %v425_v58 = vrot.slane %v424_v21, 2 }
 0x103   :  { %v418_v31 = vadd.f32 %v417_v54, %v416_v52  ;;  %v426_v10 = vadd.f32 %v425_v58, %v424_v21 }
 0x105   :  { %600 = vlog2.f32 %v418_v31  ;;  %v427_v6 = vrot.slane %v426_v10, 1 }
 0x107   :  { %v428_v62 = vadd.f32 %v427_v6, %v426_v10 }
 0x109   :  { %602 = vlog2.f32 %v428_v62 }
 0x10a   :  { %v597_v36 = vpop.eup %596 }
 0x10b   :  { %v492_v16 = vmul.f32 0.6931472, %v597_v36 }
 0x10d   :  { %v498_v27 = vadd.f32 %v492_v16, %v876_v60 }
 0x10e   :  { %v599_v12 = vpop.eup %598 }
 0x10f   :  { %v490_v42 = vmul.f32 0.6931472, %v599_v12  ;;  %v502_v20 = vsub.f32 %v498_v27, %v486_v29 }
 0x111   :  { %v497_v43 = vadd.f32 %v490_v42, %v878_v61 }
 0x112   :  { %v601_v13 = vpop.eup %600 }
 0x113   :  { %v494_v25 = vmul.f32 0.6931472, %v601_v13  ;;  %v501_v44 = vsub.f32 %v497_v43, %v485_v28 }
 0x115   :  { %v499_v30 = vadd.f32 %v494_v25, %v895_v18  ;;  %v510_v61 = vsel %vm509_vm5, %v502_v20, %v501_v44 }
 0x116   :  { %v603_v32 = vpop.eup %602 }
 0x117   :  { %v496_v63 = vmul.f32 0.6931472, %v603_v32  ;;  %v503_v19 = vsub.f32 %v499_v30, %v487_v34 }
 0x119   :  { %v500_v38 = vadd.f32 %v496_v63, %v905_v35  ;;  %v512_v18 = vsel %vm511_vm6, %v503_v19, %v510_v61 }
 0x11b   :  { %v504_v60 = vsub.f32 %v500_v38, %v488_v37 }
 0x11d   :  { %v514_v17 = vsel %vm513_vm7, %v504_v60, %v512_v18 }
 0x11e   :  { %516 = vst [vmem:[#allocation2] sm:$0xf] %v514_v17 }
 0x11f   :  { %615 = shalt.err (!%p612_p4)
}
 0x120   :  { %526 = dma.vmem_to_hbm [thread:$0]  %s524_s9, 64, %s948_s1, [#allocation3]  }
 0x121   :  { %624 = dma.done.wait [#allocation3], 64  }
 0x122   :  { %625 = vsyncadd [#allocation3], 4294967232 }
 0x123   :  { %530 = vsyncpa [#allocation3], 1 }

</bundles_post_ra>
